<compile_context>
chip_gen: v7x
topology: tpu7x:2x2x1
jax: 0.10.0
libtpu: 0.0.40
codegen_flags: <defaults>
</compile_context>

<pallas_src>
import functools

import jax
import jax.numpy as jnp
from jax.experimental import pallas as pl
from jax.experimental.pallas import tpu as pltpu


def _graph_path_drop_kernel(x_ref, s_ref, o_ref):
    # x_ref: (TM, Dp) tile of node features (Dp is a multiple of 128 -> lane dense).
    # s_ref: (TM, 1) precomputed per-node scale in f32
    #        (0.0 for dropped graphs, 1/keep_prob for kept graphs).
    # Multiply in f32 for accuracy, cast back to the output dtype (unmasked vst).
    o_ref[...] = (x_ref[...].astype(jnp.float32) * s_ref[...]).astype(o_ref.dtype)


def _round_up(x, m):
    return ((x + m - 1) // m) * m


def _vmem_capacity_bytes():
    """Trace-time query of per-core VMEM capacity; conservative fallback."""
    try:
        return int(pltpu.get_tpu_info().vmem_capacity_bytes)
    except Exception:
        return 128 << 20


def _choose_tile(n, d_pad, x_itemsize, scale_itemsize=4):
    """Pick a row tile and an explicit scoped-VMEM limit.

    Accounts for the pipelined footprint of ALL blocks:
      2 buffers x (x block + out block + lane-padded (tm,1) scale block)
    The (tm, 1) f32 scale block is padded to 128 lanes, i.e. tm*128*4 B per buffer
    (as large as the x block at d=128/f32), so it must be budgeted explicitly.
    """
    vmem_capacity = _vmem_capacity_bytes()
    if vmem_capacity <= (64 << 20):
        # v7x-like: 64 MiB VMEM, 2 TensorCores sharing HBM.
        target_block_bytes = 4 << 20
        vmem_budget = 24 << 20
        min_grid_steps = 4          # keep both TCs busy under ("parallel",)
    else:
        # v5e / v6e: 128 MiB VMEM, 1 TensorCore.
        target_block_bytes = 8 << 20
        vmem_budget = 56 << 20
        min_grid_steps = 1

    # sublane packing: f32 -> 8 rows / vreg, bf16 -> 16, int8/fp8 -> 32
    row_align = {4: 8, 2: 16, 1: 32}.get(x_itemsize, 8)

    x_row_bytes = max(1, d_pad * x_itemsize)
    scale_row_bytes = 128 * scale_itemsize            # (tm, 1) pads to 128 lanes
    per_row_pipelined = 2 * (2 * x_row_bytes + scale_row_bytes)   # 2 bufs x (x+out+scale)

    tm = min(target_block_bytes // x_row_bytes,       # amortize ~0.35 us/step overhead
             vmem_budget // per_row_pipelined)        # stay inside the VMEM budget
    tm = min(tm, _round_up(pl.cdiv(max(n, 1), min_grid_steps), row_align))
    tm = max(row_align, (tm // row_align) * row_align)
    tm = min(tm, _round_up(max(n, 1), row_align))     # never larger than (aligned) N

    vmem_limit = max(16 << 20, per_row_pipelined * tm + (4 << 20))   # + headroom
    return int(tm), int(vmem_limit)


def graph_path_drop(x, batch, *, drop_prob: float, training: bool, key,
                    num_graphs: int, tm: int | None = None):
    """Pallas implementation of GraphPathDrop.forward.

    x          : (N, D) float array of node features (node-major, features on lanes)
    batch      : (N,)   int32 array mapping each node to its graph id, in [0, num_graphs)
    num_graphs : static number of graphs (== batch.max() + 1); passed statically so
                 the op is jit-able and does not force a device->host sync.
    """
    if drop_prob is None or drop_prob == 0.0 or not training:
        return x
    if drop_prob >= 1.0:
        # Every graph is dropped; mathematically the output is zero everywhere.
        # (PyTorch's x.div(0) * 0 would produce NaN here.)
        return jnp.zeros_like(x)

    keep_prob = 1.0 - drop_prob
    n, d = x.shape

    # --- wrapper-side glue: O(num_graphs) RNG + O(N) gather, mask math in f32 ------
    u_graph = jax.random.uniform(key, (num_graphs,), dtype=jnp.float32)   # U[0, 1)
    mask = jnp.floor(keep_prob + u_graph)              # 0.0 (dropped) or 1.0 (kept)
    scale_graph = mask * (1.0 / keep_prob)             # 0 or 1/keep_prob
    scale_node = scale_graph[batch].reshape(n, 1)      # (N, 1) f32 per-node scale
    # --------------------------------------------------------------------------------

    # Keep the output store lane-dense: pad D to a multiple of 128, slice after.
    # No-op for typical equiformer_v2 dims (sphere_channels*(lmax+1)^2 is 128-aligned).
    d_pad = _round_up(d, 128)
    x_in = x if d_pad == d else jnp.pad(x, ((0, 0), (0, d_pad - d)))

    if tm is None:
        tm, vmem_limit = _choose_tile(n, d_pad, x.dtype.itemsize)
    else:
        _, vmem_limit = _choose_tile(n, d_pad, x.dtype.itemsize)

    out = pl.pallas_call(
        _graph_path_drop_kernel,
        out_shape=jax.ShapeDtypeStruct((n, d_pad), x.dtype),
        grid=(pl.cdiv(n, tm),),
        in_specs=[
            pl.BlockSpec((tm, d_pad), lambda i: (i, 0)),   # x tile (lane-dense)
            pl.BlockSpec((tm, 1), lambda i: (i, 0)),       # per-node scale (f32)
        ],
        out_specs=pl.BlockSpec((tm, d_pad), lambda i: (i, 0)),
        compiler_params=pltpu.CompilerParams(
            dimension_semantics=("parallel",),   # shard grid steps across TCs (v7x)
            vmem_limit_bytes=vmem_limit,         # sized to the actual pipelined blocks
        ),
    )(x_in, scale_node)
    # TODO(synk): if profiles on v7x show exposed DMA at block boundaries, sweep
    # pipeline_mode=pl.Buffered(3) on the x/out BlockSpecs.

    return out if d_pad == d else out[:, :d]


def _reference(x, batch, drop_prob, key, num_graphs):
    """Pure-JAX reference mirroring the PyTorch code path (mask math in f32)."""
    keep_prob = 1.0 - drop_prob
    u_graph = jax.random.uniform(key, (num_graphs,), dtype=jnp.float32)
    drop = jnp.floor(keep_prob + u_graph) / keep_prob       # path_drop(ones, ...)
    return (x.astype(jnp.float32) * drop[batch][:, None]).astype(x.dtype)


if __name__ == "__main__":
    key = jax.random.PRNGKey(0)
    k_x, k_mask, k_x2, k_x3 = jax.random.split(key, 4)

    drop_prob = 0.5

    # ---- case 1: small, tile-aligned node count (16 atoms, 4 molecules) ----
    num_nodes, feat_dim, num_graphs = 16, 128, 4
    x = jax.random.normal(k_x, (num_nodes, feat_dim), dtype=jnp.float32)
    batch = jnp.array([0, 0, 0, 0, 1, 1, 1, 2, 2, 2, 2, 2, 3, 3, 3, 3],
                      dtype=jnp.int32)

    # training=False path: identity
    out_eval = graph_path_drop(x, batch, drop_prob=drop_prob, training=False,
                               key=k_mask, num_graphs=num_graphs)
    assert jnp.array_equal(out_eval, x)

    # training=True path (jitted wrapper): kernel vs reference
    gpd = jax.jit(functools.partial(graph_path_drop, drop_prob=drop_prob,
                                    training=True, num_graphs=num_graphs))
    out = jax.block_until_ready(gpd(x, batch, key=k_mask))
    ref = _reference(x, batch, drop_prob, k_mask, num_graphs)
    assert out.shape == x.shape and out.dtype == x.dtype
    assert jnp.allclose(out, ref, atol=1e-6, rtol=1e-6), "mismatch vs reference (case 1)"

    # ---- case 2: node count not divisible by the tile (exercises cdiv / boundary) ----
    num_nodes2, num_graphs2 = 50, 3
    x2 = jax.random.normal(k_x2, (num_nodes2, feat_dim), dtype=jnp.float32)
    batch2 = jnp.concatenate([jnp.full((20,), 0, jnp.int32),
                              jnp.full((13,), 1, jnp.int32),
                              jnp.full((17,), 2, jnp.int32)])
    out2 = graph_path_drop(x2, batch2, drop_prob=drop_prob, training=True,
                           key=k_mask, num_graphs=num_graphs2)
    out2 = jax.block_until_ready(out2)
    ref2 = _reference(x2, batch2, drop_prob, k_mask, num_graphs2)
    assert jnp.allclose(out2, ref2, atol=1e-6, rtol=1e-6), "mismatch vs reference (case 2)"

    # ---- case 3: feature dim not a multiple of 128 (exercises lane padding path) ----
    num_nodes3, feat_dim3, num_graphs3 = 24, 100, 2
    x3 = jax.random.normal(k_x3, (num_nodes3, feat_dim3), dtype=jnp.bfloat16)
    batch3 = jnp.concatenate([jnp.full((11,), 0, jnp.int32),
                              jnp.full((13,), 1, jnp.int32)])
    out3 = graph_path_drop(x3, batch3, drop_prob=drop_prob, training=True,
                           key=k_mask, num_graphs=num_graphs3)
    out3 = jax.block_until_ready(out3)
    ref3 = _reference(x3, batch3, drop_prob, k_mask, num_graphs3)
    assert out3.shape == x3.shape and out3.dtype == x3.dtype
    assert jnp.allclose(out3.astype(jnp.float32), ref3.astype(jnp.float32),
                        atol=1e-2, rtol=1e-2), "mismatch vs reference (case 3)"

    print("KERNEL_OK")
</pallas_src>

<mosaic_0001>
module attributes {stable_mosaic.version = 11 : i64} {
  func.func @_graph_path_drop_kernel(%arg0: i32, %arg1: memref<16x128xf32, #tpu.memory_space<vmem>>, %arg2: memref<16x1xf32, #tpu.memory_space<vmem>>, %arg3: memref<16x128xf32, #tpu.memory_space<vmem>>) attributes {dimension_semantics = [#tpu.dimension_semantics<parallel>], iteration_bounds = array<i64: 1>, scalar_prefetch = 0 : i64, scratch_operands = 0 : i64, tpu.core_type = #tpu.core_type<tc>, window_params = [{transform_indices = @transform_0, window_bounds = array<i64: 16, 128>}, {transform_indices = @transform_1, window_bounds = array<i64: 16, 1>}, {transform_indices = @transform_2, window_bounds = array<i64: 16, 128>}]} {
    %c0 = arith.constant 0 : index
    %c0_0 = arith.constant 0 : index
    %0 = vector.load %arg1[%c0, %c0_0] : memref<16x128xf32, #tpu.memory_space<vmem>>, vector<16x128xf32>
    %c0_1 = arith.constant 0 : index
    %c0_2 = arith.constant 0 : index
    %1 = vector.load %arg2[%c0_1, %c0_2] : memref<16x1xf32, #tpu.memory_space<vmem>>, vector<16x1xf32>
    %2 = vector.broadcast %1 : vector<16x1xf32> to vector<16x128xf32>
    %3 = arith.mulf %0, %2 : vector<16x128xf32>
    %c0_3 = arith.constant 0 : index
    %c0_4 = arith.constant 0 : index
    %4 = vector.load %arg3[%c0_3, %c0_4] : memref<16x128xf32, #tpu.memory_space<vmem>>, vector<16x128xf32>
    tpu.vector_store %arg3[%c0_3, %c0_4], %3 {strides = array<i32>} : memref<16x128xf32, #tpu.memory_space<vmem>>, vector<16x128xf32>,
    return
  }
  func.func @transform_0(%arg0: i32) -> (i32, i32) {
    %c0_i32 = arith.constant 0 : i32
    %c0_i32_0 = arith.constant 0 : i32
    return %arg0, %c0_i32 : i32, i32
  }
  func.func @transform_1(%arg0: i32) -> (i32, i32) {
    %c0_i32 = arith.constant 0 : i32
    %c0_i32_0 = arith.constant 0 : i32
    return %arg0, %c0_i32 : i32, i32
  }
  func.func @transform_2(%arg0: i32) -> (i32, i32) {
    %c0_i32 = arith.constant 0 : i32
    %c0_i32_0 = arith.constant 0 : i32
    return %arg0, %c0_i32 : i32, i32
  }
}

</mosaic_0001>

<bundles_post_ra>
// kernel: graph_path_drop.1
= control target key start
LH: loop header
LB: loop body
LE: loop exit
PB: predicated region body
PF: predicated region fallthrough
CT: control target
= control target key end

     0   :  { %s118_s0 = inlined_call_operand.vmem [shape: f32[16,128], index: 0, kind: input, shape index: {}]   ;;  %s119_s1 = inlined_call_operand.vmem [shape: f32[16,1], index: 1, kind: input, shape index: {}]   ;;  %s120_s2 = inlined_call_operand.hbm [shape: f32[16,128], index: 2, kind: output, shape index: {}]  }
   0x1   :  { %v14_v0 = vld [vmem:[%s119_s1] sm:$0xff] }
   0x2   :  { %7 = vsyncpa [#allocation3], 0  ;;  %v75_v1 = vmov 0   ;;  %v15_v2 = vld [vmem:[%s119_s1 + $0x8] sm:$0xff]  ;;  %v12_v3 = vld [vmem:[%s118_s0] sm:$0xff]  ;;  %s76_s15 = smov [#allocation2]  }
   0x3   :  { %50 = vset.pattern.permute.xlu0 %v75_v1  ;;  %s35_s16 = sshll.u32 %s76_s15, 4  ;;  %v13_v6 = vld [vmem:[%s118_s0 + $0x8] sm:$0xff]  ;;  %s36_s16 = int_to_ptr.vmem [resolvable:$true] %s35_s16 }
   0x4   :  { %18 = vperm.xlu0 %50, %v14_v0   ;;  %s51_s19 = scalar_lea.vmem %s36_s16, 256  ;;  %p56_p1 = scmp.lt.s32.totalorder %s36_s16, %s36_s16 }
   0x5   :  { %p52_p0 = scmp.ne.s32.totalorder %s36_s16, %s51_s19  ;;  %p57_p2 = scmp.lt.s32.totalorder %s51_s19, %s51_s19 }
   0x7   :  { %p58_p3 = por %p57_p2, %p56_p1 }
   0x8   :  { %23 = vperm.xlu0 %50, %v15_v2  }
   0x9   :  { %p59_p4 = pnand %p58_p3, %p52_p0 }
  0x83   :  { %v19_v4 = vpop.permute.xlu0 %18 }
  0x84   :  { %v26_v5 = vmul.f32 %v19_v4, %v12_v3 }
  0x86   :  { %28 = vst [vmem:[#allocation2] sm:$0xff] %v26_v5 }
  0x87   :  { %v24_v7 = vpop.permute.xlu0 %23 }
  0x88   :  { %v27_v8 = vmul.f32 %v24_v7, %v13_v6 }
  0x8a   :  { %29 = vst [vmem:[#allocation2 + $0x8] sm:$0xff] %v27_v8 }
  0x8b   :  { %62 = shalt.err (!%p59_p4)
}
  0x8c   :  { %s63_s21 = scalar_lea.hbm %s120_s2, 256 }
  0x8d   :  { %p64_p5 = scmp.ne.s32.totalorder %s120_s2, %s63_s21  ;;  %p67_p6 = scmp.lt.u32.totalorder %s63_s21, %s120_s2 }
  0x8f   :  { %p69_p7 = pnand %p67_p6, %p64_p5 }
  0x91   :  { %72 = shalt.err (!%p69_p7)
}
  0x92   :  { %s77_s25 = smov 128   ;;  %s78_s26 = smov 8  }
  0x93   :  { %41 = dma.vmem_to_hbm [thread:$0]  %s36_s16, 256, %s120_s2, [#allocation3], %s77_s25, %s77_s25, %s78_s26  }
  0x94   :  { %73 = dma.done.wait [#allocation3], 256  }
  0x95   :  { %74 = vsyncadd [#allocation3], 4294967040 }
  0x96   :  { %45 = vsyncpa [#allocation3], 1 }

</bundles_post_ra>
